<compile_context>
chip_gen: v6e
topology: v6e:2x2x1
jax: 0.10.0
libtpu: 0.0.40
codegen_flags: <defaults>
</compile_context>

<pallas_src>
import jax
import jax.numpy as jnp
from jax.experimental import pallas as pl
from jax.experimental.pallas import tpu as pltpu

_LANE = 128
_TARGET_BLOCK_BYTES = 4 * 1024 * 1024     # ~4 MiB data / block; x4 resident (dbl-buffered in+out)
_VMEM_LIMIT_BYTES = 32 * 1024 * 1024      # explicit: above v5e's 16 MiB default, safe on v6e/v7x
_MIN_PALLAS_ELEMS = 32 * 1024             # below this, fused XLA beats pallas_call fixed overhead
_RAGGED_BLOCK_ELEMS = 64 * 1024           # lane-axis block for the (1, n) ragged path
_WIDTH_CANDIDATES = (4096, 2048, 1024, 512, 256, 128)


def _silu_kernel(x_ref, o_ref):
    # x * sigmoid(x); upcast to f32 for the EUP exp (no-op if already f32),
    # cast back so the HBM<->VMEM path stays in the input dtype.
    xf = x_ref[...].astype(jnp.float32)
    o_ref[...] = (xf * jax.nn.sigmoid(xf)).astype(o_ref.dtype)


def _cdiv(a, b):
    return -(-a // b)


@jax.jit
def mish_forward(x):
    """Elementwise x * sigmoid(x) (the module's forward) via a Pallas TPU kernel."""
    orig_shape = x.shape
    dtype = x.dtype
    n = x.size
    itemsize = jnp.dtype(dtype).itemsize

    # Tiny-input fast path: a single fused XLA pass, no pallas_call overhead.
    if n == 0 or n < _MIN_PALLAS_ELEMS:
        xf = x.astype(jnp.float32)
        return (xf * jax.nn.sigmoid(xf)).astype(dtype)

    x_flat = x.reshape(-1)                   # metadata-only for default-layout arrays
    sub = max(8, 32 // itemsize)             # sublane packing: 8 f32, 16 bf16, 32 int8/fp8
    compiler_params = pltpu.CompilerParams(
        dimension_semantics=("parallel",),   # lets v7x shard grid blocks over both TCs
        vmem_limit_bytes=_VMEM_LIMIT_BYTES,
    )

    if n % _LANE == 0:
        # Common case: exact lane-dense 2-D slab — no pad, no slice, ever.
        width = _LANE
        for w in _WIDTH_CANDIDATES:          # widest lane-dense row that still allows >=2 blocks
            if n % w == 0 and n // w >= 2 * sub:
                width = w
                break
        else:
            for w in _WIDTH_CANDIDATES:
                if n % w == 0:
                    width = w
                    break
        rows = n // width
        x2d = x_flat.reshape(rows, width)

        if rows <= sub:
            tile_rows = rows                 # single full-extent block (small slab)
        else:
            bytes_per_row = width * itemsize
            cap = max(sub, (_TARGET_BLOCK_BYTES // bytes_per_row) // sub * sub)
            # Keep >= 2 near-balanced blocks so v7x's 2 TensorCores both work.
            half_aligned = _cdiv(_cdiv(rows, 2), sub) * sub
            tile_rows = min(cap, half_aligned)
        grid = (pl.cdiv(rows, tile_rows),)   # partial last block handled by the pipeline

        out2d = pl.pallas_call(
            _silu_kernel,
            out_shape=jax.ShapeDtypeStruct((rows, width), dtype),
            grid=grid,
            in_specs=[pl.BlockSpec((tile_rows, width), lambda i: (i, 0))],
            out_specs=pl.BlockSpec((tile_rows, width), lambda i: (i, 0)),
            compiler_params=compiler_params,
        )(x2d)
        return out2d.reshape(orig_shape)

    # Ragged case (n not a multiple of 128): view as (1, n), block along the
    # lane axis, and let Pallas mask the partial final block. 1 read + 1 write,
    # no pad / un-pad HBM round trips.
    x2d = x_flat.reshape(1, n)
    half_aligned = _cdiv(_cdiv(n, 2), _LANE) * _LANE
    bw = max(_LANE, min(_RAGGED_BLOCK_ELEMS, half_aligned))   # multiple of 128, >=2 blocks
    grid = (pl.cdiv(n, bw),)

    out2d = pl.pallas_call(
        _silu_kernel,
        out_shape=jax.ShapeDtypeStruct((1, n), dtype),
        grid=grid,
        in_specs=[pl.BlockSpec((1, bw), lambda j: (0, j))],
        out_specs=pl.BlockSpec((1, bw), lambda j: (0, j)),
        compiler_params=compiler_params,
    )(x2d)
    return out2d.reshape(orig_shape)


if __name__ == "__main__":
    key = jax.random.PRNGKey(0)
    k1, k2, k3 = jax.random.split(key, 3)

    # Main test: big enough to exercise the Pallas kernel (multi-block grid,
    # lane-dense slab), still a small activation-sized tensor (128 KiB).
    x = jax.random.normal(k1, (2, 4, 64, 64), dtype=jnp.float32)
    y = mish_forward(x)
    jax.block_until_ready(y)
    y_ref = x * jax.nn.sigmoid(x)
    assert y.shape == x.shape and y.dtype == x.dtype
    assert jnp.max(jnp.abs(y - y_ref)) < 1e-5

    # Small NCHW input consistent with the module's typical usage -> fused-XLA fast path.
    xs = jax.random.normal(k2, (2, 4, 16, 16), dtype=jnp.float32)
    ys = mish_forward(xs)
    jax.block_until_ready(ys)
    assert jnp.max(jnp.abs(ys - xs * jax.nn.sigmoid(xs))) < 1e-5

    # Ragged element count (not a multiple of 128), large enough for the
    # (1, n) partial-block kernel path — no pad / slice round trips.
    xr = jax.random.normal(k3, (7, 193, 129), dtype=jnp.float32)
    yr = mish_forward(xr)
    jax.block_until_ready(yr)
    assert yr.shape == xr.shape and yr.dtype == xr.dtype
    assert jnp.max(jnp.abs(yr - xr * jax.nn.sigmoid(xr))) < 1e-5

    print("KERNEL_OK")
</pallas_src>

<mosaic_0001>
module attributes {stable_mosaic.version = 11 : i64} {
  func.func @_silu_kernel(%arg0: i32, %arg1: memref<8x2048xf32, #tpu.memory_space<vmem>>, %arg2: memref<8x2048xf32, #tpu.memory_space<vmem>>) attributes {dimension_semantics = [#tpu.dimension_semantics<parallel>], iteration_bounds = array<i64: 2>, scalar_prefetch = 0 : i64, scratch_operands = 0 : i64, tpu.core_type = #tpu.core_type<tc>, window_params = [{transform_indices = @transform_0, window_bounds = array<i64: 8, 2048>}, {transform_indices = @transform_1, window_bounds = array<i64: 8, 2048>}]} {
    %c0 = arith.constant 0 : index
    %c0_0 = arith.constant 0 : index
    %0 = vector.load %arg1[%c0, %c0_0] : memref<8x2048xf32, #tpu.memory_space<vmem>>, vector<8x2048xf32>
    %1 = arith.negf %0 : vector<8x2048xf32>
    %2 = math.exp %1 : vector<8x2048xf32>
    %cst = arith.constant 1.000000e+00 : f32
    %3 = vector.broadcast %cst : f32 to vector<8x2048xf32>
    %4 = arith.addf %3, %2 : vector<8x2048xf32>
    %5 = arith.divf %3, %4 : vector<8x2048xf32>
    %6 = arith.mulf %0, %5 : vector<8x2048xf32>
    %c0_1 = arith.constant 0 : index
    %c0_2 = arith.constant 0 : index
    %7 = vector.load %arg2[%c0_1, %c0_2] : memref<8x2048xf32, #tpu.memory_space<vmem>>, vector<8x2048xf32>
    tpu.vector_store %arg2[%c0_1, %c0_2], %6 {strides = array<i32>} : memref<8x2048xf32, #tpu.memory_space<vmem>>, vector<8x2048xf32>,
    return
  }
  func.func @transform_0(%arg0: i32) -> (i32, i32) {
    %c0_i32 = arith.constant 0 : i32
    %c0_i32_0 = arith.constant 0 : i32
    return %arg0, %c0_i32 : i32, i32
  }
  func.func @transform_1(%arg0: i32) -> (i32, i32) {
    %c0_i32 = arith.constant 0 : i32
    %c0_i32_0 = arith.constant 0 : i32
    return %arg0, %c0_i32 : i32, i32
  }
}

</mosaic_0001>

<bundles_post_ra>
// kernel: mish_forward.1
= control target key start
LH: loop header
LB: loop body
LE: loop exit
PB: predicated region body
PF: predicated region fallthrough
CT: control target
= control target key end

     0   :  { %s435_s6 = smov 0   ;;  %s559_s0 = inlined_call_operand.vmem [shape: f32[16,2048], index: 0, kind: input, shape index: {}]   ;;  %s560_s1 = inlined_call_operand.vmem [shape: f32[16,2048], index: 1, kind: output, shape index: {}]  }
   0x1 LB: > { %s316_s7 = sadd.s32 4294967295, %s423_s6   ;;  %p320_p0 = scmp.ge.s32.totalorder %s423_s6, 1  ;;  %s423_s6 = sphi %s435_s6, %s11_s6  }
   0x2   : > { %p87_p1 = scmp.lt.s32.totalorder %s423_s6, 3 }
   0x4   : > { %p88_p2 = pnand %p320_p0, %p87_p1 }
   0x5   : > { %p107_p3 = scmp.lt.s32.totalorder (!%p88_p2), %s316_s7, 1 }
   0x6   : > { %91 = sbr.rel (%p88_p2) target bundleno = 65 (0x41), region = 24 }
   0xb   : > { %s562_s7 = smov (!%p107_p3, %s316_s7), 1 }
   0xc   : > { %s343_s8 = sshll.u32 %s562_s7, 7 }
   0xd   : > { %s451_s11 = scalar_lea.vmem %s559_s0, %s343_s8  ;;  %s522_s14 = scalar_lea.vmem %s560_s1, %s343_s8 }
   0xe   : > { %v454_v0 = vld [vmem:[%s451_s11] sm:$0xff]  ;;  %v457_v1 = vld [vmem:[%s451_s11 + $0x8] sm:$0xff]  ;;  %v460_v2 = vld [vmem:[%s451_s11 + $0x10] sm:$0xff] }
   0xf   : > { %v325_v3 = vmul.f32 -1.442695, %v454_v0  ;;  %v326_v4 = vmul.f32 -1.442695, %v457_v1  ;;  %v327_v5 = vmul.f32 -1.442695, %v460_v2 }
  0x10   : > { %v466_v6 = vld [vmem:[%s451_s11 + $0x18] sm:$0xff]  ;;  %v469_v7 = vld [vmem:[%s451_s11 + $0x20] sm:$0xff]  ;;  %v472_v8 = vld [vmem:[%s451_s11 + $0x28] sm:$0xff] }
  0x11   : > { %353 = vpow2.f32 %v325_v3  ;;  %v328_v9 = vmul.f32 -1.442695, %v466_v6  ;;  %v329_v10 = vmul.f32 -1.442695, %v469_v7  ;;  %v330_v11 = vmul.f32 -1.442695, %v472_v8 }
  0x12   : > { %355 = vpow2.f32 %v326_v4  ;;  %v478_v12 = vld [vmem:[%s451_s11 + $0x30] sm:$0xff]  ;;  %v481_v13 = vld [vmem:[%s451_s11 + $0x38] sm:$0xff]  ;;  %v484_v14 = vld [vmem:[%s451_s11 + $0x40] sm:$0xff] }
  0x13   : > { %357 = vpow2.f32 %v327_v5  ;;  %v331_v15 = vmul.f32 -1.442695, %v478_v12  ;;  %v332_v16 = vmul.f32 -1.442695, %v481_v13  ;;  %v489_v17 = vld [vmem:[%s451_s11 + $0x48] sm:$0xff]  ;;  %v492_v18 = vld [vmem:[%s451_s11 + $0x50] sm:$0xff] }
  0x14   : > { %359 = vpow2.f32 %v328_v9  ;;  %v333_v19 = vmul.f32 -1.442695, %v484_v14  ;;  %v496_v20 = vld [vmem:[%s451_s11 + $0x58] sm:$0xff]  ;;  %v334_v21 = vmul.f32 -1.442695, %v489_v17  ;;  %v500_v22 = vld [vmem:[%s451_s11 + $0x60] sm:$0xff] }
  0x15   : > { %361 = vpow2.f32 %v329_v10  ;;  %v335_v23 = vmul.f32 -1.442695, %v492_v18  ;;  %v504_v24 = vld [vmem:[%s451_s11 + $0x68] sm:$0xff]  ;;  %v336_v25 = vmul.f32 -1.442695, %v496_v20  ;;  %v508_v26 = vld [vmem:[%s451_s11 + $0x70] sm:$0xff] }
  0x16   : > { %363 = vpow2.f32 %v330_v11  ;;  %v337_v27 = vmul.f32 -1.442695, %v500_v22  ;;  %v512_v28 = vld [vmem:[%s451_s11 + $0x78] sm:$0xff]  ;;  %v338_v29 = vmul.f32 -1.442695, %v504_v24 }
  0x17   : > { %365 = vpow2.f32 %v331_v15  ;;  %v339_v30 = vmul.f32 -1.442695, %v508_v26  ;;  %v340_v31 = vmul.f32 -1.442695, %v512_v28 }
  0x18   : > { %367 = vpow2.f32 %v332_v16 }
  0x19   : > { %369 = vpow2.f32 %v333_v19 }
  0x1a   : > { %371 = vpow2.f32 %v334_v21 }
  0x1b   : > { %373 = vpow2.f32 %v335_v23 }
  0x1c   : > { %375 = vpow2.f32 %v336_v25 }
  0x1d   : > { %377 = vpow2.f32 %v337_v27 }
  0x1e   : > { %v354_v32 = vpop.eup %353  ;;  %379 = vpow2.f32 %v338_v29 }
  0x1f   : > { %v356_v33 = vpop.eup %355  ;;  %v181_v34 = vadd.f32 1.0, %v354_v32  ;;  %381 = vpow2.f32 %v339_v30 }
  0x20   : > { %v358_v35 = vpop.eup %357  ;;  %v182_v36 = vadd.f32 1.0, %v356_v33  ;;  %383 = vpow2.f32 %v340_v31 }
  0x21   : > { %v360_v37 = vpop.eup %359  ;;  %385 = vrcp.f32 %v181_v34  ;;  %v183_v38 = vadd.f32 1.0, %v358_v35 }
  0x22   : > { %v362_v39 = vpop.eup %361  ;;  %387 = vrcp.f32 %v182_v36  ;;  %v184_v40 = vadd.f32 1.0, %v360_v37 }
  0x23   : > { %v364_v41 = vpop.eup %363  ;;  %389 = vrcp.f32 %v183_v38  ;;  %v185_v42 = vadd.f32 1.0, %v362_v39 }
  0x24   : > { %v366_v43 = vpop.eup %365  ;;  %391 = vrcp.f32 %v184_v40  ;;  %v186_v44 = vadd.f32 1.0, %v364_v41 }
  0x25   : > { %v368_v45 = vpop.eup %367  ;;  %393 = vrcp.f32 %v185_v42  ;;  %v187_v46 = vadd.f32 1.0, %v366_v43 }
  0x26   : > { %v370_v47 = vpop.eup %369  ;;  %395 = vrcp.f32 %v186_v44  ;;  %v188_v48 = vadd.f32 1.0, %v368_v45 }
  0x27   : > { %v372_v49 = vpop.eup %371  ;;  %397 = vrcp.f32 %v187_v46  ;;  %v189_v50 = vadd.f32 1.0, %v370_v47 }
  0x28   : > { %v374_v51 = vpop.eup %373  ;;  %399 = vrcp.f32 %v188_v48  ;;  %v190_v52 = vadd.f32 1.0, %v372_v49 }
  0x29   : > { %v376_v53 = vpop.eup %375  ;;  %401 = vrcp.f32 %v189_v50  ;;  %v191_v54 = vadd.f32 1.0, %v374_v51 }
  0x2a   : > { %v378_v55 = vpop.eup %377  ;;  %403 = vrcp.f32 %v190_v52  ;;  %v192_v56 = vadd.f32 1.0, %v376_v53 }
  0x2b   : > { %v380_v57 = vpop.eup %379  ;;  %405 = vrcp.f32 %v191_v54  ;;  %v193_v58 = vadd.f32 1.0, %v378_v55 }
  0x2c   : > { %v382_v59 = vpop.eup %381  ;;  %407 = vrcp.f32 %v192_v56  ;;  %v194_v60 = vadd.f32 1.0, %v380_v57 }
  0x2d   : > { %v384_v61 = vpop.eup %383  ;;  %409 = vrcp.f32 %v193_v58  ;;  %v195_v62 = vadd.f32 1.0, %v382_v59 }
  0x2e   : > { %v386_v63 = vpop.eup %385  ;;  %411 = vrcp.f32 %v194_v60  ;;  %v196_v3 = vadd.f32 1.0, %v384_v61 }
  0x2f   : > { %v388_v4 = vpop.eup %387  ;;  %v229_v5 = vmul.f32 %v386_v63, %v454_v0  ;;  %413 = vrcp.f32 %v195_v62 }
  0x30   : > { %v390_v9 = vpop.eup %389  ;;  %v230_v10 = vmul.f32 %v388_v4, %v457_v1  ;;  %415 = vrcp.f32 %v196_v3 }
  0x31   : > { %v392_v11 = vpop.eup %391  ;;  %245 = vst [vmem:[%s522_s14] sm:$0xff] %v229_v5  ;;  %v231_v15 = vmul.f32 %v390_v9, %v460_v2 }
  0x32   : > { %v394_v16 = vpop.eup %393  ;;  %246 = vst [vmem:[%s522_s14 + $0x8] sm:$0xff] %v230_v10  ;;  %v232_v19 = vmul.f32 %v392_v11, %v466_v6 }
  0x33   : > { %v396_v21 = vpop.eup %395  ;;  %247 = vst [vmem:[%s522_s14 + $0x10] sm:$0xff] %v231_v15  ;;  %v233_v0 = vmul.f32 %v394_v16, %v469_v7 }
  0x34   : > { %v398_v23 = vpop.eup %397  ;;  %248 = vst [vmem:[%s522_s14 + $0x18] sm:$0xff] %v232_v19  ;;  %v234_v1 = vmul.f32 %v396_v21, %v472_v8 }
  0x35   : > { %v400_v25 = vpop.eup %399  ;;  %249 = vst [vmem:[%s522_s14 + $0x20] sm:$0xff] %v233_v0  ;;  %v235_v2 = vmul.f32 %v398_v23, %v478_v12 }
  0x36   : > { %v402_v27 = vpop.eup %401  ;;  %250 = vst [vmem:[%s522_s14 + $0x28] sm:$0xff] %v234_v1  ;;  %v236_v6 = vmul.f32 %v400_v25, %v481_v13 }
  0x37   : > { %v404_v29 = vpop.eup %403  ;;  %251 = vst [vmem:[%s522_s14 + $0x30] sm:$0xff] %v235_v2  ;;  %v237_v7 = vmul.f32 %v402_v27, %v484_v14 }
  0x38   : > { %v406_v30 = vpop.eup %405  ;;  %252 = vst [vmem:[%s522_s14 + $0x38] sm:$0xff] %v236_v6  ;;  %v238_v8 = vmul.f32 %v404_v29, %v489_v17 }
  0x39   : > { %v408_v31 = vpop.eup %407  ;;  %253 = vst [vmem:[%s522_s14 + $0x40] sm:$0xff] %v237_v7  ;;  %v239_v12 = vmul.f32 %v406_v30, %v492_v18 }
  0x3a   : > { %v410_v32 = vpop.eup %409  ;;  %254 = vst [vmem:[%s522_s14 + $0x48] sm:$0xff] %v238_v8  ;;  %v240_v13 = vmul.f32 %v408_v31, %v496_v20 }
  0x3b   : > { %v412_v33 = vpop.eup %411  ;;  %255 = vst [vmem:[%s522_s14 + $0x50] sm:$0xff] %v239_v12  ;;  %v241_v14 = vmul.f32 %v410_v32, %v500_v22 }
  0x3c   : > { %v414_v34 = vpop.eup %413  ;;  %256 = vst [vmem:[%s522_s14 + $0x58] sm:$0xff] %v240_v13  ;;  %v242_v35 = vmul.f32 %v412_v33, %v504_v24 }
  0x3d   : > { %v416_v17 = vpop.eup %415  ;;  %257 = vst [vmem:[%s522_s14 + $0x60] sm:$0xff] %v241_v14  ;;  %v243_v36 = vmul.f32 %v414_v34, %v508_v26 }
  0x3e   : > { %258 = vst [vmem:[%s522_s14 + $0x68] sm:$0xff] %v242_v35  ;;  %v244_v18 = vmul.f32 %v416_v17, %v512_v28 }
  0x3f   : > { %259 = vst [vmem:[%s522_s14 + $0x70] sm:$0xff] %v243_v36 }
  0x40   : > { %260 = vst [vmem:[%s522_s14 + $0x78] sm:$0xff] %v244_v18 }
  0x41 PF: > { %s11_s6 = sadd.s32 1, %s423_s6  }
  0x42   : > { %p8_p4 = scmp.ge.s32.totalorder %s11_s6, 4  }
  0x44   :  { %10 = sbr.rel (!%p8_p4) target bundleno = 1 (0x1), region = 54 }

</bundles_post_ra>
